<compile_context>
chip_gen: v5e
topology: v5e:2x2
jax: 0.10.0
libtpu: 0.0.40
codegen_flags: <defaults>
</compile_context>

<pallas_src>
import functools

import jax
import jax.numpy as jnp
from jax.experimental import pallas as pl
from jax.experimental.pallas import tpu as pltpu

HIDDEN = 32
DROPOUT_P = 0.1
LN_EPS = 1e-5          # torch.nn.LayerNorm default
LANES = 128
MAX_TILE_M = 2048      # packed rows per grid step -> 1 MiB f32 tile (128 lanes)

# splitmix32-style mixing constants, expressed as int32 (two's complement).
_C_GOLDEN = -1640531527    # 0x9E3779B9
_C_MIX1 = 2146087213       # 0x7feb352d
_C_MIX2 = -2073254261      # 0x846ca68b


def _lsr(x, k):
    """Logical right shift for int32 vectors (arithmetic shift + mask)."""
    mask = jnp.int32((1 << (32 - k)) - 1)
    return jnp.bitwise_and(jnp.right_shift(x, k), mask)


def _keep_mask(seed, row_base, shape, dropout_p):
    """Per-element Bernoulli(1-p) keep mask from a counter hash (f32 0/1)."""
    rows = jax.lax.broadcasted_iota(jnp.int32, shape, 0)
    cols = jax.lax.broadcasted_iota(jnp.int32, shape, 1)
    idx = (row_base + rows) * jnp.int32(shape[1]) + cols     # unique per element
    h = idx + seed * jnp.int32(_C_GOLDEN)
    h = h ^ _lsr(h, 16)
    h = h * jnp.int32(_C_MIX1)
    h = h ^ _lsr(h, 15)
    h = h * jnp.int32(_C_MIX2)
    h = h ^ _lsr(h, 16)
    r = _lsr(h, 8)                                           # uniform in [0, 2^24)
    threshold = jnp.int32(int(dropout_p * float(1 << 24)))
    return (r >= threshold).astype(jnp.float32)


def _sublayer_connection_kernel(
    seed_ref,     # SMEM scalar-prefetch: (1,) int32 dropout seed
    x_ref,        # (TILE_M, LW) lane-dense packed input
    gmat_ref,     # (LW, LW) block-diag group-mean matrix (ones(H,H)/H blocks)
    gamma_ref,    # (1, LW) LayerNorm weight, tiled PACK times
    beta_ref,     # (1, LW) LayerNorm bias, tiled PACK times
    wbd_ref,      # (LW, LW) block-diag Linear weight (PACK copies of W)
    b_ref,        # (1, LW) Linear bias, tiled PACK times
    o_ref,        # (TILE_M, LW) output
    *,
    dropout_p: float,
    tile_m: int,
):
    x = x_ref[...].astype(jnp.float32)                       # (T, LW)
    gmat = gmat_ref[...]
    hi = jax.lax.Precision.HIGHEST

    # LayerNorm over each H-lane group: mean/var via block-diag matmul; result
    # arrives already broadcast across its group (no XLU reductions needed).
    mean = jnp.dot(x, gmat, preferred_element_type=jnp.float32, precision=hi)
    c = x - mean
    var = jnp.dot(c * c, gmat, preferred_element_type=jnp.float32, precision=hi)
    xn = c * jax.lax.rsqrt(var + LN_EPS)
    y = xn * gamma_ref[...] + beta_ref[...]

    # Sublayer Linear(H, H), applied per group via the block-diagonal weight.
    z = jnp.dot(y, wbd_ref[...], preferred_element_type=jnp.float32,
                precision=hi) + b_ref[...]

    # Inverted dropout (training-mode semantics), per-tile-independent mask.
    if dropout_p > 0.0:
        row_base = pl.program_id(0) * tile_m
        keep = _keep_mask(seed_ref[0], row_base, z.shape, dropout_p)
        z = z * keep * (1.0 / (1.0 - dropout_p))

    # Residual add; lane-dense unmasked store.
    o_ref[...] = (x + z).astype(o_ref.dtype)


def sublayer_connection(x, gamma, beta, w, b, seed, dropout_p=DROPOUT_P):
    """x: (B, S, H). Returns x + dropout(Linear(LayerNorm(x))) in x.dtype."""
    B, S, H = x.shape
    pack = LANES // H if LANES % H == 0 else 1
    lane_w = pack * H
    N = B * S

    x2d = x.reshape(N, H).astype(jnp.float32)

    # Pad rows so they pack evenly into lane-dense rows (zeros -> finite junk,
    # sliced off below).
    n_pad = (-N) % pack
    if n_pad:
        x2d = jnp.pad(x2d, ((0, n_pad), (0, 0)))
    M = (N + n_pad) // pack
    x_dense = x2d.reshape(M, lane_w)          # free row-major repacking

    # Row-tile the packed slab; pad to a whole number of tiles.
    tile_m = M if M <= MAX_TILE_M else MAX_TILE_M
    grid_m = pl.cdiv(M, tile_m)
    m_pad = grid_m * tile_m - M
    if m_pad:
        x_dense = jnp.pad(x_dense, ((0, m_pad), (0, 0)))

    # Parameters, presented lane-dense / block-diagonal.
    eye = jnp.eye(pack, dtype=jnp.float32)
    gmat = jnp.kron(eye, jnp.full((H, H), 1.0 / H, dtype=jnp.float32))
    wbd = jnp.kron(eye, w.astype(jnp.float32))
    gamma_d = jnp.tile(gamma.astype(jnp.float32), pack).reshape(1, lane_w)
    beta_d = jnp.tile(beta.astype(jnp.float32), pack).reshape(1, lane_w)
    b_d = jnp.tile(b.astype(jnp.float32), pack).reshape(1, lane_w)

    seed_arr = jnp.asarray([seed], dtype=jnp.int32)
    kernel = functools.partial(
        _sublayer_connection_kernel, dropout_p=float(dropout_p), tile_m=tile_m)

    grid_spec = pltpu.PrefetchScalarGridSpec(
        num_scalar_prefetch=1,
        grid=(grid_m,),
        in_specs=[
            pl.BlockSpec((tile_m, lane_w), lambda i, s: (i, 0)),   # x (tiled)
            pl.BlockSpec((lane_w, lane_w), lambda i, s: (0, 0)),   # gmat
            pl.BlockSpec((1, lane_w), lambda i, s: (0, 0)),        # gamma
            pl.BlockSpec((1, lane_w), lambda i, s: (0, 0)),        # beta
            pl.BlockSpec((lane_w, lane_w), lambda i, s: (0, 0)),   # W block-diag
            pl.BlockSpec((1, lane_w), lambda i, s: (0, 0)),        # bias
        ],
        out_specs=pl.BlockSpec((tile_m, lane_w), lambda i, s: (i, 0)),
    )

    out_dense = pl.pallas_call(
        kernel,
        out_shape=jax.ShapeDtypeStruct((grid_m * tile_m, lane_w), x.dtype),
        grid_spec=grid_spec,
        compiler_params=pltpu.CompilerParams(
            dimension_semantics=("parallel",)),     # independent row tiles
    )(seed_arr, x_dense, gmat, gamma_d, beta_d, wbd, b_d)

    out2d = out_dense.reshape(grid_m * tile_m * pack, H)[:N]
    return out2d.reshape(B, S, H).astype(x.dtype)


def _reference(x, gamma, beta, w, b):
    """Pure-JAX forward (no dropout) for a correctness sanity check."""
    mean = jnp.mean(x, axis=-1, keepdims=True)
    c = x - mean
    var = jnp.mean(c * c, axis=-1, keepdims=True)
    xn = c * jax.lax.rsqrt(var + LN_EPS)
    y = xn * gamma + beta
    z = jnp.dot(y, w) + b
    return x + z


if __name__ == "__main__":
    B, S, H = 2, 8, HIDDEN
    key = jax.random.PRNGKey(0)
    kx, kw, kb = jax.random.split(key, 3)

    x = jax.random.normal(kx, (B, S, H), dtype=jnp.float32)

    # LayerNorm params (PyTorch default init: weight=1, bias=0).
    gamma = jnp.ones((H,), dtype=jnp.float32)
    beta = jnp.zeros((H,), dtype=jnp.float32)

    # Sublayer = Linear(H, H); deterministic synthetic init.
    w = jax.random.normal(kw, (H, H), dtype=jnp.float32) * (1.0 / (H ** 0.5))
    b = jax.random.normal(kb, (H,), dtype=jnp.float32) * 0.01

    # Deterministic check (dropout disabled) against the pure-JAX reference.
    out_nodrop = sublayer_connection(x, gamma, beta, w, b, seed=0, dropout_p=0.0)
    ref = _reference(x, gamma, beta, w, b)
    assert bool(jnp.allclose(out_nodrop, ref, atol=1e-3, rtol=1e-3))

    # Training-mode path with dropout.
    out = sublayer_connection(x, gamma, beta, w, b, seed=42, dropout_p=DROPOUT_P)
    jax.block_until_ready(out)

    assert out.shape == (B, S, H) and out.dtype == jnp.float32
    assert bool(jnp.all(jnp.isfinite(out)))
    print("KERNEL_OK")
</pallas_src>

<mosaic_0001>
module attributes {stable_mosaic.version = 11 : i64} {
  func.func @_sublayer_connection_kernel(%arg0: i32, %arg1: memref<1xi32, #tpu.memory_space<smem>>, %arg2: memref<4x128xf32, #tpu.memory_space<vmem>>, %arg3: memref<128x128xf32, #tpu.memory_space<vmem>>, %arg4: memref<1x128xf32, #tpu.memory_space<vmem>>, %arg5: memref<1x128xf32, #tpu.memory_space<vmem>>, %arg6: memref<128x128xf32, #tpu.memory_space<vmem>>, %arg7: memref<1x128xf32, #tpu.memory_space<vmem>>, %arg8: memref<4x128xf32, #tpu.memory_space<vmem>>) attributes {dimension_semantics = [#tpu.dimension_semantics<parallel>], iteration_bounds = array<i64: 1>, scalar_prefetch = 1 : i64, scratch_operands = 0 : i64, tpu.core_type = #tpu.core_type<tc>, window_params = [{transform_indices = @transform_0, window_bounds = array<i64: 4, 128>}, {pipeline_mode = #tpu.pipeline_mode<synchronous>, transform_indices = @transform_1, window_bounds = array<i64: 128, 128>}, {pipeline_mode = #tpu.pipeline_mode<synchronous>, transform_indices = @transform_2, window_bounds = array<i64: 1, 128>}, {pipeline_mode = #tpu.pipeline_mode<synchronous>, transform_indices = @transform_3, window_bounds = array<i64: 1, 128>}, {pipeline_mode = #tpu.pipeline_mode<synchronous>, transform_indices = @transform_4, window_bounds = array<i64: 128, 128>}, {pipeline_mode = #tpu.pipeline_mode<synchronous>, transform_indices = @transform_5, window_bounds = array<i64: 1, 128>}, {transform_indices = @transform_6, window_bounds = array<i64: 4, 128>}]} {
    %c0 = arith.constant 0 : index
    %c0_0 = arith.constant 0 : index
    %0 = vector.load %arg2[%c0, %c0_0] : memref<4x128xf32, #tpu.memory_space<vmem>>, vector<4x128xf32>
    %c0_1 = arith.constant 0 : index
    %c0_2 = arith.constant 0 : index
    %1 = vector.load %arg3[%c0_1, %c0_2] : memref<128x128xf32, #tpu.memory_space<vmem>>, vector<128x128xf32>
    %cst = arith.constant dense<0.000000e+00> : vector<4x128xf32>
    %2 = tpu.matmul %0, %1, %cst {dimension_numbers = #tpu.dot_dimension_numbers<[1], [0], [0], [1], [0, 0, 1, 1], [], []>, precision = #tpu.contract_precision<fp32>} : vector<4x128xf32>, vector<128x128xf32>, vector<4x128xf32> -> vector<4x128xf32>
    %3 = arith.subf %0, %2 : vector<4x128xf32>
    %4 = arith.mulf %3, %3 : vector<4x128xf32>
    %cst_3 = arith.constant dense<0.000000e+00> : vector<4x128xf32>
    %5 = tpu.matmul %4, %1, %cst_3 {dimension_numbers = #tpu.dot_dimension_numbers<[1], [0], [0], [1], [0, 0, 1, 1], [], []>, precision = #tpu.contract_precision<fp32>} : vector<4x128xf32>, vector<128x128xf32>, vector<4x128xf32> -> vector<4x128xf32>
    %cst_4 = arith.constant 9.99999974E-6 : f32
    %6 = vector.broadcast %cst_4 : f32 to vector<4x128xf32>
    %7 = arith.addf %5, %6 : vector<4x128xf32>
    %8 = math.rsqrt %7 : vector<4x128xf32>
    %9 = arith.mulf %3, %8 : vector<4x128xf32>
    %c0_5 = arith.constant 0 : index
    %c0_6 = arith.constant 0 : index
    %10 = vector.load %arg4[%c0_5, %c0_6] : memref<1x128xf32, #tpu.memory_space<vmem>>, vector<1x128xf32>
    %11 = vector.broadcast %10 : vector<1x128xf32> to vector<4x128xf32>
    %12 = arith.mulf %9, %11 : vector<4x128xf32>
    %c0_7 = arith.constant 0 : index
    %c0_8 = arith.constant 0 : index
    %13 = vector.load %arg5[%c0_7, %c0_8] : memref<1x128xf32, #tpu.memory_space<vmem>>, vector<1x128xf32>
    %14 = vector.broadcast %13 : vector<1x128xf32> to vector<4x128xf32>
    %15 = arith.addf %12, %14 : vector<4x128xf32>
    %c0_9 = arith.constant 0 : index
    %c0_10 = arith.constant 0 : index
    %16 = vector.load %arg6[%c0_9, %c0_10] : memref<128x128xf32, #tpu.memory_space<vmem>>, vector<128x128xf32>
    %cst_11 = arith.constant dense<0.000000e+00> : vector<4x128xf32>
    %17 = tpu.matmul %15, %16, %cst_11 {dimension_numbers = #tpu.dot_dimension_numbers<[1], [0], [0], [1], [0, 0, 1, 1], [], []>, precision = #tpu.contract_precision<fp32>} : vector<4x128xf32>, vector<128x128xf32>, vector<4x128xf32> -> vector<4x128xf32>
    %c0_12 = arith.constant 0 : index
    %c0_13 = arith.constant 0 : index
    %18 = vector.load %arg7[%c0_12, %c0_13] : memref<1x128xf32, #tpu.memory_space<vmem>>, vector<1x128xf32>
    %19 = vector.broadcast %18 : vector<1x128xf32> to vector<4x128xf32>
    %20 = arith.addf %17, %19 : vector<4x128xf32>
    %21 = arith.addf %0, %20 : vector<4x128xf32>
    %c0_14 = arith.constant 0 : index
    %c0_15 = arith.constant 0 : index
    %22 = vector.load %arg8[%c0_14, %c0_15] : memref<4x128xf32, #tpu.memory_space<vmem>>, vector<4x128xf32>
    tpu.vector_store %arg8[%c0_14, %c0_15], %21 {strides = array<i32>} : memref<4x128xf32, #tpu.memory_space<vmem>>, vector<4x128xf32>,
    return
  }
  func.func @transform_0(%arg0: i32, %arg1: memref<1xi32, #tpu.memory_space<smem>>) -> (i32, i32) {
    %c0_i32 = arith.constant 0 : i32
    %c0_i32_0 = arith.constant 0 : i32
    return %arg0, %c0_i32 : i32, i32
  }
  func.func @transform_1(%arg0: i32, %arg1: memref<1xi32, #tpu.memory_space<smem>>) -> (i32, i32) {
    %c0_i32 = arith.constant 0 : i32
    %c0_i32_0 = arith.constant 0 : i32
    %c0_i32_1 = arith.constant 0 : i32
    return %c0_i32, %c0_i32_0 : i32, i32
  }
  func.func @transform_2(%arg0: i32, %arg1: memref<1xi32, #tpu.memory_space<smem>>) -> (i32, i32) {
    %c0_i32 = arith.constant 0 : i32
    %c0_i32_0 = arith.constant 0 : i32
    %c0_i32_1 = arith.constant 0 : i32
    return %c0_i32, %c0_i32_0 : i32, i32
  }
  func.func @transform_3(%arg0: i32, %arg1: memref<1xi32, #tpu.memory_space<smem>>) -> (i32, i32) {
    %c0_i32 = arith.constant 0 : i32
    %c0_i32_0 = arith.constant 0 : i32
    %c0_i32_1 = arith.constant 0 : i32
    return %c0_i32, %c0_i32_0 : i32, i32
  }
  func.func @transform_4(%arg0: i32, %arg1: memref<1xi32, #tpu.memory_space<smem>>) -> (i32, i32) {
    %c0_i32 = arith.constant 0 : i32
    %c0_i32_0 = arith.constant 0 : i32
    %c0_i32_1 = arith.constant 0 : i32
    return %c0_i32, %c0_i32_0 : i32, i32
  }
  func.func @transform_5(%arg0: i32, %arg1: memref<1xi32, #tpu.memory_space<smem>>) -> (i32, i32) {
    %c0_i32 = arith.constant 0 : i32
    %c0_i32_0 = arith.constant 0 : i32
    %c0_i32_1 = arith.constant 0 : i32
    return %c0_i32, %c0_i32_0 : i32, i32
  }
  func.func @transform_6(%arg0: i32, %arg1: memref<1xi32, #tpu.memory_space<smem>>) -> (i32, i32) {
    %c0_i32 = arith.constant 0 : i32
    %c0_i32_0 = arith.constant 0 : i32
    return %arg0, %c0_i32 : i32, i32
  }
}

</mosaic_0001>

<bundles_post_ra>
// kernel: tpu_custom_call.1
= control target key start
LH: loop header
LB: loop body
LE: loop exit
PB: predicated region body
PF: predicated region fallthrough
CT: control target
= control target key end

     0   :  { %13 = vsyncpa [#allocation5], 0  ;;  %s1965_s0 = inlined_call_operand.<no memory space> [shape: s32[1], index: 0, kind: input, shape index: {}]   ;;  %s1966_s1 = inlined_call_operand.hbm [shape: f32[4,128], index: 1, kind: input, shape index: {}]   ;;  %s1967_s2 = inlined_call_operand.hbm [shape: f32[128,128], index: 2, kind: input, shape index: {}]   ;;  %s1968_s3 = inlined_call_operand.vmem [shape: f32[1,128], index: 3, kind: input, shape index: {}]   ;;  %s1969_s4 = inlined_call_operand.vmem [shape: f32[1,128], index: 4, kind: input, shape index: {}]   ;;  %s1970_s5 = inlined_call_operand.hbm [shape: f32[128,128], index: 5, kind: input, shape index: {}]   ;;  %s1971_s6 = inlined_call_operand.vmem [shape: f32[1,128], index: 6, kind: input, shape index: {}]   ;;  %s1972_s7 = inlined_call_operand.hbm [shape: f32[4,128], index: 7, kind: output, shape index: {}]  }
   0x1   :  { %14 = vsyncpa [#allocation8], 0  ;;  %s31_s25 = sshll.u32 %s1967_s2, 4  ;;  %s32_s25 = int_to_ptr.hbm [resolvable:$true] %s31_s25 }
   0x2   :  { %15 = vsyncpa [#allocation6], 0  ;;  %s1287_s26 = smov [#allocation7]   ;;  %s21_s30 = sshll.u32 %s1966_s1, 4  ;;  %s22_s30 = int_to_ptr.hbm [resolvable:$true] %s21_s30 }
   0x3   :  { %s33_s27 = sshll.u32 %s1287_s26, 4  ;;  %s1288_s8 = smov 128   ;;  %s34_s27 = int_to_ptr.vmem [resolvable:$true] %s33_s27 }
   0x4   :  { %s1289_s9 = smov 8   ;;  %s1290_s10 = smov [#allocation4]  }
   0x5   :  { %39 = dma.hbm_to_vmem [thread:$0]  %s32_s25, 2048, %s34_s27, [#allocation8], %s1288_s8, %s1288_s8, %s1289_s9  }
   0x6   :  { %s23_s11 = sshll.u32 %s1290_s10, 4  ;;  %s48_s14 = sshll.u32 %s1970_s5, 4  ;;  %s24_s11 = int_to_ptr.vmem [resolvable:$true] %s23_s11  ;;  %s49_s14 = int_to_ptr.hbm [resolvable:$true] %s48_s14 }
   0x7   :  { %26 = dma.hbm_to_vmem [thread:$0]  %s22_s30, 64, %s24_s11, [#allocation5]  }
   0x8   :  { %s1291_s2 = smov [#allocation9]  }
   0x9   :  { %s50_s15 = sshll.u32 %s1291_s2, 4  ;;  %s51_s15 = int_to_ptr.vmem [resolvable:$true] %s50_s15 }
   0xa   :  { %56 = dma.hbm_to_vmem [thread:$0]  %s49_s14, 2048, %s51_s15, [#allocation8], %s1288_s8, %s1288_s8, %s1289_s9  }
   0xb   :  { %1281 = dma.done.wait [#allocation5], 64  }
   0xc   :  { %1282 = vsyncadd [#allocation5], 4294967232 }
   0xd   :  { %1283 = dma.done.wait [#allocation8], 4096  }
   0xe   :  { %1284 = vsyncadd [#allocation8], 4294963200  ;;  %v87_v0 = vld [vmem:[#allocation7 + $0x78] sm:$0xff]  ;;  %v86_v1 = vld [vmem:[#allocation7 + $0x70] sm:$0xff]  ;;  %s1163_s22 = sshll.u32 %s1972_s7, 4  ;;  %s1164_s22 = int_to_ptr.hbm [resolvable:$true] %s1163_s22 }
   0xf   :  { %v85_v2 = vld [vmem:[#allocation7 + $0x68] sm:$0xff]  ;;  %v1342_v3 = vand.u32 4294901760, %v87_v0  ;;  %v1344_v4 = vand.u32 4294901760, %v86_v1  ;;  %v84_v6 = vld [vmem:[#allocation7 + $0x60] sm:$0xff]  ;;  %v83_v7 = vld [vmem:[#allocation7 + $0x58] sm:$0xff] }
  0x10   :  { %v1346_v5 = vand.u32 4294901760, %v85_v2  ;;  %v82_v8 = vld [vmem:[#allocation7 + $0x50] sm:$0xff]  ;;  %v1348_v9 = vand.u32 4294901760, %v84_v6  ;;  %v1350_v10 = vand.u32 4294901760, %v83_v7  ;;  %v81_v12 = vld [vmem:[#allocation7 + $0x48] sm:$0xff]  ;;  %v80_v13 = vld [vmem:[#allocation7 + $0x40] sm:$0xff] }
  0x11   :  { %v1352_v11 = vand.u32 4294901760, %v82_v8  ;;  %89 = vmatpush.msra.mxu0 %v1342_v3  ;;  %v1356_v14 = vsub.f32 %v87_v0, %v1342_v3  ;;  %v1359_v15 = vsub.f32 %v86_v1, %v1344_v4  ;;  %v1364_v17 = vand.u32 4294901760, %v81_v12  ;;  %v79_v18 = vld [vmem:[#allocation7 + $0x38] sm:$0xff]  ;;  %285 = vmatpush.msra.mxu3 %v1342_v3  ;;  %v78_v26 = vld [vmem:[#allocation7 + $0x30] sm:$0xff]  ;;  %v77_v36 = vld [vmem:[#allocation7 + $0x28] sm:$0xff] }
  0x12   :  { %v1362_v16 = vsub.f32 %v85_v2, %v1346_v5  ;;  %v1368_v19 = vsub.f32 %v84_v6, %v1348_v9  ;;  %v1371_v20 = vsub.f32 %v83_v7, %v1350_v10  ;;  %v1386_v25 = vand.u32 4294901760, %v80_v13  ;;  %v76_v42 = vld [vmem:[#allocation7 + $0x20] sm:$0xff]  ;;  %v75_v47 = vld [vmem:[#allocation7 + $0x18] sm:$0xff]  ;;  %v74_v55 = vld [vmem:[#allocation7 + $0x10] sm:$0xff] }
  0x13   :  { %v1374_v21 = vsub.f32 %v82_v8, %v1352_v11  ;;  %91 = vmatpush.msra.mxu0 %v1344_v4  ;;  %v1378_v22 = vand.u32 4294901760, %v1356_v14  ;;  %v1381_v23 = vand.u32 4294901760, %v1359_v15  ;;  %232 = vmatpush.msra.mxu2 %v1356_v14  ;;  %v1392_v28 = vand.u32 4294901760, %v79_v18  ;;  %v73_v60 = vld [vmem:[#allocation7 + $0x8] sm:$0xff]  ;;  %v72_v1 = vld [vmem:[#allocation7] sm:$0xff] }
  0x14   :  { %v1384_v24 = vand.u32 4294901760, %v1362_v16  ;;  %v1390_v27 = vand.u32 4294901760, %v1368_v19  ;;  %v1395_v29 = vsub.f32 %v81_v12, %v1364_v17  ;;  %287 = vmatpush.msra.mxu3 %v1344_v4  ;;  %v1406_v33 = vand.u32 4294901760, %v1371_v20  ;;  %v1496_v7 = vld [vmem:[#allocation4] sm:$0xf] }
  0x15   :  { %93 = vmatpush.msra.mxu0 %v1346_v5  ;;  %v132_v30 = vsub.f32 %v1356_v14, %v1378_v22  ;;  %v138_v31 = vsub.f32 %v1359_v15, %v1381_v23  ;;  %235 = vmatpush.msra.mxu2 %v1359_v15  ;;  %v1410_v34 = vand.u32 4294901760, %v1374_v21  ;;  %v1412_v35 = vand.u32 4294901760, %v78_v26  ;;  %1988 = vst [vmem:[#allocation20_spill] sm:$0xff] %v1496_v7 }
  0x16   :  { %v144_v32 = vsub.f32 %v1362_v16, %v1384_v24  ;;  %289 = vmatpush.msra.mxu3 %v1346_v5  ;;  %v150_v39 = vsub.f32 %v1368_v19, %v1390_v27  ;;  %v1423_v40 = vsub.f32 %v80_v13, %v1386_v25  ;;  %v1427_v41 = vand.u32 4294901760, %v1395_v29 }
  0x17   :  { %v1415_v37 = vand.u32 4294901760, %v132_v30  ;;  %95 = vmatpush.msra.mxu0 %v1348_v9  ;;  %v1418_v38 = vand.u32 4294901760, %v138_v31  ;;  %238 = vmatpush.msra.mxu2 %v1362_v16  ;;  %v156_v44 = vsub.f32 %v1371_v20, %v1406_v33  ;;  %v1436_v45 = vand.u32 4294901760, %v77_v36 }
  0x18   :  { %1982 = vst [vmem:[#allocation14_spill] sm:$0xff] %v1423_v40  ;;  %291 = vmatpush.msra.mxu3 %v1348_v9  ;;  %v1432_v43 = vand.u32 4294901760, %v144_v32  ;;  %v1439_v46 = vsub.f32 %v79_v18, %v1392_v28  ;;  %v162_v48 = vsub.f32 %v1374_v21, %v1410_v34  ;;  %v1447_v49 = vand.u32 4294901760, %v150_v39 }
  0x19   :  { %134 = vmatpush.msra.mxu1 %v1415_v37  ;;  %97 = vmatpush.msra.mxu0 %v1350_v10  ;;  %v1450_v50 = vand.u32 4294901760, %v1423_v40  ;;  %v1452_v51 = vand.u32 4294901760, %v76_v42  ;;  %v1455_v52 = vsub.f32 %v78_v26, %v1412_v35  ;;  %v168_v53 = vsub.f32 %v1395_v29, %v1427_v41 }
  0x1a   :  { %1983 = vst [vmem:[#allocation15_spill] sm:$0xff] %v1439_v46  ;;  %241 = vmatpush.msra.mxu2 %v1368_v19  ;;  %293 = vmatpush.msra.mxu3 %v1350_v10  ;;  %v1459_v54 = vand.u32 4294901760, %v75_v47  ;;  %v1465_v56 = vand.u32 4294901760, %v156_v44  ;;  %v1468_v57 = vand.u32 4294901760, %v1439_v46  ;;  %v1471_v58 = vsub.f32 %v77_v36, %v1436_v45 }
  0x1b   :  { %140 = vmatpush.msra.mxu1 %v1418_v38  ;;  %99 = vmatpush.msra.mxu0 %v1352_v11  ;;  %1984 = vst [vmem:[#allocation16_spill] sm:$0xff] %v1455_v52  ;;  %v1473_v59 = vand.u32 4294901760, %v162_v48  ;;  %v174_v61 = vsub.f32 %v1423_v40, %v1450_v50  ;;  %v1482_v62 = vand.u32 4294901760, %v1455_v52  ;;  %v1484_v63 = vand.u32 4294901760, %v74_v55 }
  0x1c   :  { %244 = vmatpush.msra.mxu2 %v1371_v20  ;;  %295 = vmatpush.msra.mxu3 %v1352_v11  ;;  %1985 = vst [vmem:[#allocation17_spill] sm:$0xff] %v1471_v58  ;;  %v1487_v0 = vsub.f32 %v76_v42, %v1452_v51  ;;  %v1489_v2 = vand.u32 4294901760, %v168_v53  ;;  %v1492_v6 = vsub.f32 %v75_v47, %v1459_v54  ;;  %v1503_v12 = vand.u32 4294901760, %v1471_v58 }
  0x1d   :  { %146 = vmatpush.msra.mxu1 %v1432_v43  ;;  %101 = vmatpush.msra.mxu0 %v1364_v17  ;;  %v180_v8 = vsub.f32 %v1439_v46, %v1468_v57  ;;  %v1505_v13 = vand.u32 4294901760, %v73_v60  ;;  %v1508_v18 = vand.u32 4294901760, %v1496_v7  ;;  %v1510_v26 = vand.u32 4294901760, %v72_v1 }
  0x1e   :  { %247 = vmatpush.msra.mxu2 %v1374_v21  ;;  %297 = vmatpush.msra.mxu3 %v1364_v17  ;;  %1986 = vst [vmem:[#allocation18_spill] sm:$0xff] %v1487_v0  ;;  %v1516_v30 = vand.u32 4294901760, %v174_v61  ;;  %v186_v31 = vsub.f32 %v1455_v52, %v1482_v62  ;;  %v1521_v32 = vand.u32 4294901760, %v1487_v0  ;;  %v1524_v36 = vsub.f32 %v74_v55, %v1484_v63 }
  0x1f   :  { %152 = vmatpush.msra.mxu1 %v1447_v49  ;;  %103 = vmatpush.msra.mxu0 %v1386_v25  ;;  %1987 = vst [vmem:[#allocation19_spill] sm:$0xff] %v1492_v6  ;;  %v1527_v39 = vand.u32 4294901760, %v1492_v6  ;;  %v1533_v42 = vand.u32 4294901760, %v180_v8  ;;  %v192_v44 = vsub.f32 %v1471_v58, %v1503_v12  ;;  %v1538_v47 = vsub.f32 %v73_v60, %v1505_v13 }
  0x20   :  { %250 = vmatpush.msra.mxu2 %v1395_v29  ;;  %299 = vmatpush.msra.mxu3 %v1386_v25  ;;  %1989 = vst [vmem:[#allocation21_spill] sm:$0xff] %v1524_v36  ;;  %v121_v48 = vsub.f32 %v1496_v7, %v1508_v18  ;;  %v1546_v53 = vand.u32 4294901760, %v186_v31  ;;  %v198_v55 = vsub.f32 %v1487_v0, %v1521_v32  ;;  %v1551_v61 = vand.u32 4294901760, %v1524_v36 }
  0x21   :  { %158 = vmatpush.msra.mxu1 %v1465_v56  ;;  %105 = vmatpush.msra.mxu0 %v1392_v28  ;;  %v1554_v60 = vsub.f32 %v72_v1, %v1510_v26  ;;  %v1560_v8 = vand.u32 4294901760, %v192_v44  ;;  %v204_v31 = vsub.f32 %v1492_v6, %v1527_v39  ;;  %v1565_v7 = vand.u32 4294901760, %v1538_v47 }
  0x22   :  { %253 = vmatpush.msra.mxu2 %v1423_v40  ;;  %301 = vmatpush.msra.mxu3 %v1392_v28  ;;  %v1571_v1 = vand.u32 4294901760, %v198_v55  ;;  %v210_v44 = vsub.f32 %v1524_v36, %v1551_v61 }
  0x23   :  { %164 = vmatpush.msra.mxu1 %v1473_v59  ;;  %107 = vmatpush.msra.mxu0 %v1412_v35  ;;  %v216_v55 = vsub.f32 %v1538_v47, %v1565_v7 }
  0x24   :  { %256 = vmatpush.msra.mxu2 %v1439_v46  ;;  %303 = vmatpush.msra.mxu3 %v1412_v35 }
  0x25   :  { %170 = vmatpush.msra.mxu1 %v1489_v2  ;;  %109 = vmatpush.msra.mxu0 %v1436_v45 }
  0x26   :  { %259 = vmatpush.msra.mxu2 %v1455_v52  ;;  %305 = vmatpush.msra.mxu3 %v1436_v45  ;;  %v122_v52 = vand.u32 4294901760, %v121_v48 }
  0x27   :  { %176 = vmatpush.msra.mxu1 %v1516_v30  ;;  %111 = vmatpush.msra.mxu0 %v1452_v51 }
  0x28   :  { %262 = vmatpush.msra.mxu2 %v1471_v58  ;;  %307 = vmatpush.msra.mxu3 %v1452_v51  ;;  %v1576_v58 = vand.u32 4294901760, %v1554_v60  ;;  %v123_v46 = vsub.f32 %v121_v48, %v122_v52 }
  0x29   :  { %182 = vmatpush.msra.mxu1 %v1533_v42  ;;  %113 = vmatpush.msra.mxu0 %v1459_v54 }
  0x2a   :  { %265 = vmatpush.msra.mxu2 %v1487_v0  ;;  %309 = vmatpush.msra.mxu3 %v1459_v54  ;;  %v1582_v0 = vand.u32 4294901760, %v204_v31  ;;  %v222_v40 = vsub.f32 %v1554_v60, %v1576_v58  ;;  %v1597_v31 = vand.u32 4294901760, %v216_v55 }
  0x2b   :  { %188 = vmatpush.msra.mxu1 %v1546_v53  ;;  %115 = vmatpush.msra.mxu0 %v1484_v63 }
  0x2c   :  { %268 = vmatpush.msra.mxu2 %v1492_v6  ;;  %311 = vmatpush.msra.mxu3 %v1484_v63  ;;  %v1590_v6 = vand.u32 4294901760, %v210_v44  ;;  %v1603_v44 = vand.u32 4294901760, %v222_v40 }
  0x2d   :  { %194 = vmatpush.msra.mxu1 %v1560_v8  ;;  %117 = vmatpush.msra.mxu0 %v1505_v13 }
  0x2e   :  { %271 = vmatpush.msra.mxu2 %v1524_v36  ;;  %313 = vmatpush.msra.mxu3 %v1505_v13  ;;  %v124_v36 = vand.u32 4294901760, %v123_v46 }
  0x2f   :  { %200 = vmatpush.msra.mxu1 %v1571_v1  ;;  %119 = vmatpush.msra.mxu0 %v1510_v26 }
  0x30   :  { %274 = vmatpush.msra.mxu2 %v1538_v47  ;;  %315 = vmatpush.msra.mxu3 %v1510_v26 }
  0x31   :  { %326 = vmatpush.msrb.mxu0 %v1378_v22  ;;  %206 = vmatpush.msra.mxu1 %v1582_v0 }
  0x32   :  { %277 = vmatpush.msra.mxu2 %v1554_v60  ;;  %319 = vmatmul.f32.vlgmr.msra.gmra.mxu3 %v122_v52 }
  0x33   :  { %330 = vmatpush.msrb.mxu0 %v1381_v23  ;;  %212 = vmatpush.msra.mxu1 %v1590_v6 }
  0x34   :  { %280 = vmatmul.f32.vlgmr.msra.gmra.mxu2 %v121_v48  ;;  %125 = vmatmul.f32.vlgmr.msra.gmra.mxu0 %v124_v36 }
  0x35   :  { %334 = vmatpush.msrb.mxu0 %v1384_v24  ;;  %218 = vmatpush.msra.mxu1 %v1597_v31 }
  0x36   :  { %477 = vmatpush.msrb.mxu3 %v1415_v37  ;;  %432 = vmatpush.msrb.mxu2 %v1342_v3 }
  0x37   :  { %338 = vmatpush.msrb.mxu0 %v1390_v27  ;;  %224 = vmatpush.msra.mxu1 %v1603_v44 }
  0x38   :  { %226 = vmatmul.f32.vlgmr.msra.gmra.mxu1 %v1508_v18  ;;  %483 = vmatpush.msrb.mxu3 %v1418_v38 }
  0x39   :  { %393 = vmatpush.msrb.mxu1 %v1342_v3  ;;  %342 = vmatpush.msrb.mxu0 %v1406_v33 }
  0x3a   :  { %489 = vmatpush.msrb.mxu3 %v1432_v43  ;;  %434 = vmatpush.msrb.mxu2 %v1344_v4 }
  0x3b   :  { %395 = vmatpush.msrb.mxu1 %v1344_v4  ;;  %346 = vmatpush.msrb.mxu0 %v1410_v34 }
  0x3c   :  { %495 = vmatpush.msrb.mxu3 %v1447_v49  ;;  %436 = vmatpush.msrb.mxu2 %v1346_v5  ;;  %v1997_v49 = vld [vmem:[#allocation20_spill] sm:$0xff] }
  0x3d   :  { %397 = vmatpush.msrb.mxu1 %v1346_v5  ;;  %350 = vmatpush.msrb.mxu0 %v1427_v41 }
  0x3e   :  { %501 = vmatpush.msrb.mxu3 %v1465_v56  ;;  %438 = vmatpush.msrb.mxu2 %v1348_v9 }
  0x3f   :  { %399 = vmatpush.msrb.mxu1 %v1348_v9  ;;  %354 = vmatpush.msrb.mxu0 %v1450_v50 }
  0x40   :  { %507 = vmatpush.msrb.mxu3 %v1473_v59  ;;  %440 = vmatpush.msrb.mxu2 %v1350_v10  ;;  %v806_v59 = vld [vmem:[#allocation9 + $0x68] sm:$0xff] }
  0x41   :  { %401 = vmatpush.msrb.mxu1 %v1350_v10  ;;  %358 = vmatpush.msrb.mxu0 %v1468_v57 }
  0x42   :  { %513 = vmatpush.msrb.mxu3 %v1489_v2  ;;  %442 = vmatpush.msrb.mxu2 %v1352_v11 }
  0x43   :  { %403 = vmatpush.msrb.mxu1 %v1352_v11  ;;  %362 = vmatpush.msrb.mxu0 %v1482_v62 }
  0x44   :  { %519 = vmatpush.msrb.mxu3 %v1516_v30  ;;  %444 = vmatpush.msrb.mxu2 %v1364_v17 }
  0x45   :  { %405 = vmatpush.msrb.mxu1 %v1364_v17  ;;  %366 = vmatpush.msrb.mxu0 %v1503_v12 }
  0x46   :  { %525 = vmatpush.msrb.mxu3 %v1533_v42  ;;  %446 = vmatpush.msrb.mxu2 %v1386_v25 }
  0x47   :  { %407 = vmatpush.msrb.mxu1 %v1386_v25  ;;  %370 = vmatpush.msrb.mxu0 %v1521_v32 }
  0x48   :  { %531 = vmatpush.msrb.mxu3 %v1546_v53  ;;  %448 = vmatpush.msrb.mxu2 %v1392_v28 }
  0x49   :  { %409 = vmatpush.msrb.mxu1 %v1392_v28  ;;  %374 = vmatpush.msrb.mxu0 %v1527_v39 }
  0x4a   :  { %537 = vmatpush.msrb.mxu3 %v1560_v8  ;;  %450 = vmatpush.msrb.mxu2 %v1412_v35 }
  0x4b   :  { %411 = vmatpush.msrb.mxu1 %v1412_v35  ;;  %378 = vmatpush.msrb.mxu0 %v1551_v61 }
  0x4c   :  { %543 = vmatpush.msrb.mxu3 %v1571_v1  ;;  %452 = vmatpush.msrb.mxu2 %v1436_v45 }
  0x4d   :  { %413 = vmatpush.msrb.mxu1 %v1436_v45  ;;  %382 = vmatpush.msrb.mxu0 %v1565_v7 }
  0x4e   :  { %549 = vmatpush.msrb.mxu3 %v1582_v0  ;;  %454 = vmatpush.msrb.mxu2 %v1452_v51 }
  0x4f   :  { %415 = vmatpush.msrb.mxu1 %v1452_v51  ;;  %386 = vmatpush.msrb.mxu0 %v1576_v58 }
  0x50   :  { %388 = vmatmul.f32.vlgmr.msrb.gmra.mxu0 %v1508_v18  ;;  %555 = vmatpush.msrb.mxu3 %v1590_v6  ;;  %v804_v6 = vld [vmem:[#allocation9 + $0x58] sm:$0xff] }
  0x51   :  { %417 = vmatpush.msrb.mxu1 %v1459_v54  ;;  %575 = vmatpush.msra.mxu0 %v1356_v14  ;;  %v1996_v14 = vld [vmem:[#allocation21_spill] sm:$0xff] }
  0x52   :  { %561 = vmatpush.msrb.mxu3 %v1597_v31  ;;  %456 = vmatpush.msrb.mxu2 %v1459_v54 }
  0x53   :  { %419 = vmatpush.msrb.mxu1 %v1484_v63  ;;  %578 = vmatpush.msra.mxu0 %v1359_v15 }
  0x54   :  { %567 = vmatpush.msrb.mxu3 %v1603_v44  ;;  %458 = vmatpush.msrb.mxu2 %v1484_v63 }
  0x55   :  { %421 = vmatpush.msrb.mxu1 %v1505_v13  ;;  %581 = vmatpush.msra.mxu0 %v1362_v16 }
  0x56   :  { %736 = vmatpush.msra.mxu3 %v1342_v3  ;;  %460 = vmatpush.msrb.mxu2 %v1505_v13 }
  0x57   :  { %423 = vmatpush.msrb.mxu1 %v1510_v26  ;;  %584 = vmatpush.msra.mxu0 %v1368_v19 }
  0x58   :  { %425 = vmatmul.f32.vlgmr.msrb.gmra.mxu1 %v1508_v18  ;;  %738 = vmatpush.msra.mxu3 %v1344_v4  ;;  %v803_v18 = vld [vmem:[#allocation9 + $0x50] sm:$0xff] }
  0x59   :  { %628 = vmatpush.msra.mxu1 %v1342_v3  ;;  %587 = vmatpush.msra.mxu0 %v1371_v20  ;;  %v1990_v3 = vld [vmem:[#allocation14_spill] sm:$0xff]  ;;  %v1790_v36 = vand.u32 4294901760, %v803_v18 }
  0x5a   :  { %740 = vmatpush.msra.mxu3 %v1346_v5  ;;  %462 = vmatpush.msrb.mxu2 %v1510_v26 }
  0x5b   :  { %630 = vmatpush.msra.mxu1 %v1344_v4  ;;  %590 = vmatpush.msra.mxu0 %v1374_v21  ;;  %v1991_v4 = vld [vmem:[#allocation15_spill] sm:$0xff]  ;;  %v1800_v53 = vsub.f32 %v803_v18, %v1790_v36 }
  0x5c   :  { %742 = vmatpush.msra.mxu3 %v1348_v9  ;;  %669 = vmatpush.msra.mxu2 %v1378_v22  ;;  %v808_v22 = vld [vmem:[#allocation9 + $0x78] sm:$0xff] }
  0x5d   :  { %632 = vmatpush.msra.mxu1 %v1346_v5  ;;  %593 = vmatpush.msra.mxu0 %v1395_v29  ;;  %v1992_v5 = vld [vmem:[#allocation16_spill] sm:$0xff]  ;;  %v886_v55 = vand.u32 4294901760, %v1800_v53 }
  0x5e   :  { %744 = vmatpush.msra.mxu3 %v1350_v10  ;;  %673 = vmatpush.msra.mxu2 %v1381_v23  ;;  %v807_v23 = vld [vmem:[#allocation9 + $0x70] sm:$0xff] }
  0x5f   :  { %634 = vmatpush.msra.mxu1 %v1348_v9  ;;  %596 = vmatpush.msra.mxu0 %v1990_v3  ;;  %v1993_v9 = vld [vmem:[#allocation17_spill] sm:$0xff] }
  0x60   :  { %746 = vmatpush.msra.mxu3 %v1352_v11  ;;  %677 = vmatpush.msra.mxu2 %v1384_v24  ;;  %v1736_v24 = vand.u32 4294901760, %v808_v22  ;;  %v800_v3 = vld [vmem:[#allocation9 + $0x38] sm:$0xff] }
  0x61   :  { %636 = vmatpush.msra.mxu1 %v1350_v10  ;;  %599 = vmatpush.msra.mxu0 %v1991_v4  ;;  %v1994_v10 = vld [vmem:[#allocation18_spill] sm:$0xff] }
  0x62   :  { %748 = vmatpush.msra.mxu3 %v1364_v17  ;;  %681 = vmatpush.msra.mxu2 %v1390_v27  ;;  %v1741_v29 = vsub.f32 %v808_v22, %v1736_v24 }
  0x63   :  { %638 = vmatpush.msra.mxu1 %v1352_v11  ;;  %602 = vmatpush.msra.mxu0 %v1992_v5  ;;  %v1995_v11 = vld [vmem:[#allocation19_spill] sm:$0xff]  ;;  %v887_v5 = vsub.f32 %v1800_v53, %v886_v55 }
  0x64   :  { %750 = vmatpush.msra.mxu3 %v1386_v25  ;;  %685 = vmatpush.msra.mxu2 %v1406_v33 }
  0x65   :  { %640 = vmatpush.msra.mxu1 %v1364_v17  ;;  %605 = vmatpush.msra.mxu0 %v1993_v9 }
  0x66   :  { %752 = vmatpush.msra.mxu3 %v1392_v28  ;;  %689 = vmatpush.msra.mxu2 %v1410_v34  ;;  %v856_v34 = vand.u32 4294901760, %v1741_v29 }
  0x67   :  { %642 = vmatpush.msra.mxu1 %v1386_v25  ;;  %608 = vmatpush.msra.mxu0 %v1994_v10  ;;  %v1738_v25 = vand.u32 4294901760, %v807_v23  ;;  %v1825_v10 = vand.u32 4294901760, %v800_v3 }
  0x68   :  { %754 = vmatpush.msra.mxu3 %v1412_v35  ;;  %693 = vmatpush.msra.mxu2 %v1427_v41  ;;  %v857_v40 = vsub.f32 %v1741_v29, %v856_v34 }
  0x69   :  { %644 = vmatpush.msra.mxu1 %v1392_v28  ;;  %611 = vmatpush.msra.mxu0 %v1995_v11  ;;  %v1744_v33 = vsub.f32 %v807_v23, %v1738_v25 }
  0x6a   :  { %756 = vmatpush.msra.mxu3 %v1436_v45  ;;  %697 = vmatpush.msra.mxu2 %v1450_v50 }
  0x6b   :  { %646 = vmatpush.msra.mxu1 %v1412_v35  ;;  %614 = vmatpush.msra.mxu0 %v1996_v14  ;;  %v862_v35 = vand.u32 4294901760, %v1744_v33  ;;  %v799_v14 = vld [vmem:[#allocation9 + $0x30] sm:$0xff] }
  0x6c   :  { %758 = vmatpush.msra.mxu3 %v1452_v51  ;;  %701 = vmatpush.msra.mxu2 %v1468_v57 }
  0x6d   :  { %648 = vmatpush.msra.mxu1 %v1436_v45  ;;  %617 = vmatpush.msra.mxu0 %v1538_v47  ;;  %v863_v41 = vsub.f32 %v1744_v33, %v862_v35  ;;  %v858_v45 = vand.u32 4294901760, %v857_v40 }
  0x6e   :  { %760 = vmatpush.msra.mxu3 %v1459_v54  ;;  %705 = vmatpush.msra.mxu2 %v1482_v62  ;;  %v1765_v62 = vand.u32 4294901760, %v806_v59 }
  0x6f   :  { %650 = vmatpush.msra.mxu1 %v1452_v51  ;;  %620 = vmatpush.msra.mxu0 %v1554_v60  ;;  %v864_v46 = vand.u32 4294901760, %v863_v41  ;;  %v801_v60 = vld [vmem:[#allocation9 + $0x40] sm:$0xff] }
  0x70   :  { %762 = vmatpush.msra.mxu3 %v1484_v63  ;;  %709 = vmatpush.msra.mxu2 %v1503_v12  ;;  %v1768_v0 = vsub.f32 %v806_v59, %v1765_v62  ;;  %v1811_v31 = vand.u32 4294901760, %v801_v60  ;;  %v795_v59 = vld [vmem:[#allocation9 + $0x10] sm:$0xff] }
  0x71   :  { %652 = vmatpush.msra.mxu1 %v1459_v54  ;;  %814 = vmatpush.msrb.mxu0 %v1736_v24 }
  0x72   :  { %764 = vmatpush.msra.mxu3 %v1505_v13  ;;  %713 = vmatpush.msra.mxu2 %v1521_v32  ;;  %v1823_v9 = vsub.f32 %v801_v60, %v1811_v31 }
  0x73   :  { %654 = vmatpush.msra.mxu1 %v1484_v63  ;;  %816 = vmatpush.msrb.mxu0 %v1738_v25  ;;  %v805_v63 = vld [vmem:[#allocation9 + $0x60] sm:$0xff] }
  0x74   :  { %766 = vmatpush.msra.mxu3 %v1510_v26  ;;  %717 = vmatpush.msra.mxu2 %v1527_v39  ;;  %v1770_v2 = vand.u32 4294901760, %v805_v63  ;;  %v802_v39 = vld [vmem:[#allocation9 + $0x48] sm:$0xff] }
  0x75   :  { %656 = vmatpush.msra.mxu1 %v1505_v13  ;;  %818 = vmatpush.msrb.mxu0 %v1765_v62  ;;  %v1778_v13 = vand.u32 4294901760, %v804_v6 }
  0x76   :  { %721 = vmatpush.msra.mxu2 %v1551_v61  ;;  %v1776_v12 = vsub.f32 %v805_v63, %v1770_v2  ;;  %v1804_v61 = vand.u32 4294901760, %v802_v39 }
  0x77   :  { %658 = vmatpush.msra.mxu1 %v1510_v26  ;;  %820 = vmatpush.msrb.mxu0 %v1770_v2  ;;  %v1788_v32 = vsub.f32 %v804_v6, %v1778_v13 }
  0x78   :  { %725 = vmatpush.msra.mxu2 %v1565_v7  ;;  %v868_v7 = vand.u32 4294901760, %v1768_v0  ;;  %v874_v30 = vand.u32 4294901760, %v1776_v12  ;;  %v1815_v44 = vsub.f32 %v802_v39, %v1804_v61 }
  0x79   :  { %859 = vmatpush.msrb.mxu1 %v858_v45  ;;  %822 = vmatpush.msrb.mxu0 %v1778_v13  ;;  %v880_v48 = vand.u32 4294901760, %v1788_v32 }
  0x7a   :  { %729 = vmatpush.msra.mxu2 %v1576_v58  ;;  %v869_v26 = vsub.f32 %v1768_v0, %v868_v7  ;;  %v875_v47 = vsub.f32 %v1776_v12, %v874_v30  ;;  %v892_v11 = vand.u32 4294901760, %v1815_v44 }
  0x7b   :  { %865 = vmatpush.msrb.mxu1 %v864_v46  ;;  %824 = vmatpush.msrb.mxu0 %v1790_v36  ;;  %v881_v1 = vsub.f32 %v1788_v32, %v880_v48 }
  0x7c   :  { %v870_v42 = vand.u32 4294901760, %v869_v26  ;;  %v876_v8 = vand.u32 4294901760, %v875_v47  ;;  %v1883_v26 = vand.u32 4294901760, %v795_v59 }
  0x7d   :  { %826 = vmatpush.msrb.mxu0 %v1804_v61  ;;  %v882_v4 = vand.u32 4294901760, %v881_v1 }
  0x7e   :  { %871 = vmatpush.msrb.mxu1 %v870_v42  ;;  %v794_v42 = vld [vmem:[#allocation9 + $0x8] sm:$0xff] }
  0x7f   :  { %828 = vmatpush.msrb.mxu0 %v1811_v31  ;;  %v1893_v1 = vand.u32 4294901760, %v794_v42 }
  0x80   :  { %877 = vmatpush.msrb.mxu1 %v876_v8  ;;  %v1891_v8 = vsub.f32 %v795_v59, %v1883_v26 }
  0x81   :  { %830 = vmatpush.msrb.mxu0 %v1825_v10 }
  0x82   :  { %883 = vmatpush.msrb.mxu1 %v882_v4  ;;  %v793_v4 = vld [vmem:[#allocation9] sm:$0xff] }
  0xb1   :  { %v126_v16 = vpop.f32.mrf.mxu0 }
  0xb5   :  { %v227_v15 = vpop.f32.mrf.mxu1  ;;  %v320_v21 = vpop.f32.mrf.mxu3 }
  0xb6   :  { %v228_v17 = vadd.f32 %v227_v15, %v126_v16  ;;  %v888_v15 = vand.u32 4294901760, %v887_v5  ;;  %v898_v16 = vand.u32 4294901760, %v1823_v9 }
  0xb7   :  { %v281_v19 = vpop.f32.mrf.mxu2 }
  0xb8   :  { %v282_v20 = vadd.f32 %v281_v19, %v228_v17  ;;  %v1832_v17 = vsub.f32 %v800_v3, %v1825_v10  ;;  %v1834_v19 = vand.u32 4294901760, %v799_v14  ;;  %889 = vmatpush.msrb.mxu1 %v888_v15  ;;  %v899_v22 = vsub.f32 %v1823_v9, %v898_v16 }
  0xb9   :  { %v939_v15 = vsub.f32 %v794_v42, %v1893_v1 }
  0xba   :  { %v321_v27 = vadd.f32 %v320_v21, %v282_v20  ;;  %v893_v20 = vsub.f32 %v1815_v44, %v892_v11  ;;  %v798_v21 = vld [vmem:[#allocation9 + $0x28] sm:$0xff]  ;;  %v904_v23 = vand.u32 4294901760, %v1832_v17  ;;  %832 = vmatpush.msrb.mxu0 %v1834_v19  ;;  %v900_v40 = vand.u32 4294901760, %v899_v22 }
  0xbc   :  { %v905_v41 = vsub.f32 %v1832_v17, %v904_v23 }
  0xcd   :  { %v389_v28 = vpop.f32.mrf.mxu0 }
  0xce   :  { %v390_v37 = vadd.f32 %v389_v28, %v321_v27  ;;  %v1847_v27 = vsub.f32 %v799_v14, %v1834_v19  ;;  %v1849_v28 = vand.u32 4294901760, %v798_v21  ;;  %v934_v14 = vand.u32 4294901760, %v1891_v8 }
  0xd0   :  { %v1859_v45 = vsub.f32 %v798_v21, %v1849_v28  ;;  %834 = vmatpush.msrb.mxu0 %v1849_v28 }
  0xd5   :  { %v426_v38 = vpop.f32.mrf.mxu1 }
  0xd6   :  { %v427_v43 = vadd.f32 %v426_v38, %v390_v37  ;;  %v894_v37 = vand.u32 4294901760, %v893_v20  ;;  %v797_v38 = vld [vmem:[#allocation9 + $0x20] sm:$0xff]  ;;  %v1902_v20 = vand.u32 4294901760, %v793_v4 }
  0xd7   :  { %v1862_v46 = vand.u32 4294901760, %v797_v38 }
  0xd8   :  { %v1757_v50 = vsub.f32 %v1997_v49, %v427_v43  ;;  %v910_v43 = vand.u32 4294901760, %v1847_v27  ;;  %895 = vmatpush.msrb.mxu1 %v894_v37  ;;  %v935_v37 = vsub.f32 %v1891_v8, %v934_v14 }
  0xd9   :  { %836 = vmatpush.msrb.mxu0 %v1862_v46 }
  0xda   :  { %v430_v51 = vmul.f32 %v1757_v50, %v1757_v50  ;;  %901 = vmatpush.msrb.mxu1 %v900_v40  ;;  %v945_v40 = vsub.f32 %v793_v4, %v1902_v20 }
  0xdc   :  { %v463_v52 = vand.u32 4294901760, %v430_v51 }
  0xde   :  { %v464_v54 = vsub.f32 %v430_v51, %v463_v52  ;;  %569 = vmatmul.f32.vlgmr.msrb.gmra.mxu3 %v463_v52  ;;  %v796_v51 = vld [vmem:[#allocation9 + $0x18] sm:$0xff] }
  0xdf   :  { %1010 = vmatpush.msrb.mxu3 %v1736_v24 }
  0xe0   :  { %623 = vmatmul.f32.vlgmr.msra.gmra.mxu0 %v464_v54  ;;  %v465_v56 = vand.u32 4294901760, %v464_v54 }
  0xe1   :  { %1012 = vmatpush.msrb.mxu3 %v1738_v25 }
  0xe2   :  { %662 = vmatmul.f32.vlgmr.msra.gmra.mxu1 %v465_v56  ;;  %v466_v57 = vsub.f32 %v464_v54, %v465_v56  ;;  %v911_v54 = vsub.f32 %v1847_v27, %v910_v43  ;;  %v916_v56 = vand.u32 4294901760, %v1859_v45 }
  0xe3   :  { %1014 = vmatpush.msrb.mxu3 %v1765_v62 }
  0xe4   :  { %v467_v58 = vand.u32 4294901760, %v466_v57  ;;  %v1869_v57 = vand.u32 4294901760, %v796_v51  ;;  %v912_v63 = vand.u32 4294901760, %v911_v54  ;;  %v917_v6 = vsub.f32 %v1859_v45, %v916_v56 }
  0xe5   :  { %1016 = vmatpush.msrb.mxu3 %v1770_v2 }
  0xe6   :  { %468 = vmatmul.f32.vlgmr.msrb.gmra.mxu2 %v467_v58  ;;  %768 = vmatmul.f32.vlgmr.msra.gmra.mxu3 %v463_v52  ;;  %v1874_v58 = vsub.f32 %v797_v38, %v1862_v46  ;;  %v1881_v18 = vsub.f32 %v796_v51, %v1869_v57  ;;  %v918_v47 = vand.u32 4294901760, %v917_v6  ;;  %v940_v38 = vand.u32 4294901760, %v939_v15 }
  0xe7   :  { %957 = vmatpush.msrb.mxu2 %v1741_v29  ;;  %1018 = vmatpush.msrb.mxu3 %v1778_v13 }
  0xe8   :  { %v922_v39 = vand.u32 4294901760, %v1874_v58  ;;  %838 = vmatpush.msrb.mxu0 %v1869_v57  ;;  %v928_v60 = vand.u32 4294901760, %v1881_v18  ;;  %v941_v51 = vsub.f32 %v939_v15, %v940_v38 }
  0xe9   :  { %960 = vmatpush.msrb.mxu2 %v1744_v33  ;;  %1020 = vmatpush.msrb.mxu3 %v1790_v36 }
  0xea   :  { %v923_v3 = vsub.f32 %v1874_v58, %v922_v39  ;;  %840 = vmatpush.msrb.mxu0 %v1883_v26  ;;  %v929_v5 = vsub.f32 %v1881_v18, %v928_v60  ;;  %v942_v54 = vand.u32 4294901760, %v941_v51 }
  0xeb   :  { %963 = vmatpush.msrb.mxu2 %v1768_v0  ;;  %1022 = vmatpush.msrb.mxu3 %v1804_v61 }
  0xec   :  { %v924_v21 = vand.u32 4294901760, %v923_v3  ;;  %842 = vmatpush.msrb.mxu0 %v1893_v1  ;;  %v930_v22 = vand.u32 4294901760, %v929_v5 }
  0xed   :  { %966 = vmatpush.msrb.mxu2 %v1776_v12  ;;  %1024 = vmatpush.msrb.mxu3 %v1811_v31 }
  0xee   :  { %731 = vmatmul.f32.vlgmr.msra.gmra.mxu2 %v463_v52  ;;  %v906_v52 = vand.u32 4294901760, %v905_v41  ;;  %844 = vmatpush.msrb.mxu0 %v1902_v20  ;;  %v936_v41 = vand.u32 4294901760, %v935_v37 }
  0xef   :  { %969 = vmatpush.msrb.mxu2 %v1788_v32  ;;  %1026 = vmatpush.msrb.mxu3 %v1825_v10 }
  0xf0   :  { %907 = vmatpush.msrb.mxu1 %v906_v52  ;;  %v946_v52 = vand.u32 4294901760, %v945_v40  ;;  %1051 = vmatpush.msra.mxu0 %v856_v34 }
  0xf1   :  { %972 = vmatpush.msrb.mxu2 %v1800_v53  ;;  %1028 = vmatpush.msrb.mxu3 %v1834_v19 }
  0xf2   :  { %913 = vmatpush.msrb.mxu1 %v912_v63  ;;  %1055 = vmatpush.msra.mxu0 %v862_v35 }
  0xf3   :  { %975 = vmatpush.msrb.mxu2 %v1815_v44  ;;  %1030 = vmatpush.msrb.mxu3 %v1849_v28 }
  0xf4   :  { %919 = vmatpush.msrb.mxu1 %v918_v47  ;;  %1059 = vmatpush.msra.mxu0 %v868_v7 }
  0xf5   :  { %978 = vmatpush.msrb.mxu2 %v1823_v9  ;;  %1032 = vmatpush.msrb.mxu3 %v1862_v46  ;;  %v1181_v9 = vld [vmem:[%s1969_s4] ss:$0 sm:$0xff]  ;;  %s1292_s4 = smov [#allocation10]  }
  0xf6   :  { %925 = vmatpush.msrb.mxu1 %v924_v21  ;;  %1063 = vmatpush.msra.mxu0 %v874_v30  ;;  %s1161_s19 = sshll.u32 %s1292_s4, 4  ;;  %s1162_s19 = int_to_ptr.vmem [resolvable:$true] %s1161_s19 }
  0xf7   :  { %981 = vmatpush.msrb.mxu2 %v1832_v17  ;;  %1034 = vmatpush.msrb.mxu3 %v1869_v57 }
  0xf8   :  { %931 = vmatpush.msrb.mxu1 %v930_v22  ;;  %1067 = vmatpush.msra.mxu0 %v880_v48 }
  0xf9   :  { %984 = vmatpush.msrb.mxu2 %v1847_v27  ;;  %1036 = vmatpush.msrb.mxu3 %v1883_v26 }
  0xfa   :  { %937 = vmatpush.msrb.mxu1 %v936_v41  ;;  %1071 = vmatpush.msra.mxu0 %v886_v55  ;;  %v1180_v55 = vld [vmem:[%s1968_s3] ss:$0 sm:$0xff] }
  0xfb   :  { %987 = vmatpush.msrb.mxu2 %v1859_v45  ;;  %1038 = vmatpush.msrb.mxu3 %v1893_v1 }
  0xfc   :  { %943 = vmatpush.msrb.mxu1 %v942_v54  ;;  %1075 = vmatpush.msra.mxu0 %v892_v11 }
  0xfd   :  { %990 = vmatpush.msrb.mxu2 %v1874_v58  ;;  %1040 = vmatpush.msrb.mxu3 %v1902_v20  ;;  %v947_v58 = vsub.f32 %v945_v40, %v946_v52 }
  0xfe   :  { %1079 = vmatpush.msra.mxu0 %v898_v16 }
  0xff   :  { %993 = vmatpush.msrb.mxu2 %v1881_v18  ;;  %v948_v59 = vand.u32 4294901760, %v947_v58 }
 0x100   :  { %1083 = vmatpush.msra.mxu0 %v904_v23 }
 0x101   :  { %996 = vmatpush.msrb.mxu2 %v1891_v8  ;;  %949 = vmatpush.msrb.mxu1 %v948_v59 }
 0x102   :  { %1087 = vmatpush.msra.mxu0 %v910_v43 }
 0x103   :  { %999 = vmatpush.msrb.mxu2 %v939_v15  ;;  %1118 = vmatpush.msra.mxu1 %v1736_v24 }
 0x104   :  { %1091 = vmatpush.msra.mxu0 %v916_v56 }
 0x105   :  { %1002 = vmatpush.msrb.mxu2 %v945_v40  ;;  %1120 = vmatpush.msra.mxu1 %v1738_v25 }
 0x106   :  { %1095 = vmatpush.msra.mxu0 %v922_v39 }
 0x107   :  { %1122 = vmatpush.msra.mxu1 %v1765_v62 }
 0x108   :  { %1099 = vmatpush.msra.mxu0 %v928_v60 }
 0x109   :  { %1124 = vmatpush.msra.mxu1 %v1770_v2 }
 0x10a   :  { %1103 = vmatpush.msra.mxu0 %v934_v14 }
 0x10b   :  { %1126 = vmatpush.msra.mxu1 %v1778_v13 }
 0x10c   :  { %1107 = vmatpush.msra.mxu0 %v940_v38 }
 0x10d   :  { %1128 = vmatpush.msra.mxu1 %v1790_v36 }
 0x10e   :  { %1111 = vmatpush.msra.mxu0 %v946_v52 }
 0x10f   :  { %1130 = vmatpush.msra.mxu1 %v1804_v61 }
 0x111   :  { %1132 = vmatpush.msra.mxu1 %v1811_v31 }
 0x113   :  { %1134 = vmatpush.msra.mxu1 %v1825_v10 }
 0x115   :  { %1136 = vmatpush.msra.mxu1 %v1834_v19 }
 0x117   :  { %1138 = vmatpush.msra.mxu1 %v1849_v28 }
 0x119   :  { %1140 = vmatpush.msra.mxu1 %v1862_v46 }
 0x11b   :  { %1142 = vmatpush.msra.mxu1 %v1869_v57 }
 0x11d   :  { %1144 = vmatpush.msra.mxu1 %v1883_v26 }
 0x11f   :  { %1146 = vmatpush.msra.mxu1 %v1893_v1 }
 0x121   :  { %1148 = vmatpush.msra.mxu1 %v1902_v20 }
 0x15d   :  { %v624_v34 = vpop.f32.mrf.mxu0 }
 0x15f   :  { %v663_v62 = vpop.f32.mrf.mxu1 }
 0x161   :  { %v570_v24 = vpop.f32.mrf.mxu3 }
 0x169   :  { %v469_v25 = vpop.f32.mrf.mxu2  ;;  %v769_v12 = vpop.f32.mrf.mxu3 }
 0x16a   :  { %v470_v29 = vadd.f32 1e-05, %v469_v25 }
 0x16c   :  { %v571_v33 = vadd.f32 %v570_v24, %v470_v29 }
 0x16e   :  { %v625_v35 = vadd.f32 %v624_v34, %v571_v33 }
 0x170   :  { %v664_v0 = vadd.f32 %v663_v62, %v625_v35 }
 0x171   :  { %v732_v2 = vpop.f32.mrf.mxu2 }
 0x172   :  { %v733_v7 = vadd.f32 %v732_v2, %v664_v0 }
 0x174   :  { %v770_v13 = vadd.f32 %v769_v12, %v733_v7 }
 0x176   :  { %1183 = vrsqrt.f32 %v770_v13  ;;  %vm778_vm1 = vweird.f32 %v770_v13 }
 0x17c   :  { %v1184_v30 = vpop.eup %1183 }
 0x17d   :  { %v773_v32 = vmul.f32 %v1184_v30, %v770_v13  ;;  %vm779_vm0 = vweird.f32 %v1184_v30 }
 0x17e   :  { %vm780_vm2 = vmor %vm778_vm1, %vm779_vm0 }
 0x17f   :  { %v774_v36 = vmul.f32 %v1184_v30, %v773_v32 }
 0x181   :  { %v775_v48 = vmul.f32 0.5, %v774_v36 }
 0x183   :  { %v776_v53 = vsub.f32 1.5, %v775_v48 }
 0x185   :  { %v777_v61 = vmul.f32 %v1184_v30, %v776_v53 }
 0x187   :  { %v781_v31 = vsel %vm780_vm2, %v1184_v30, %v777_v61 }
 0x188   :  { %v782_v44 = vmul.f32 %v781_v31, %v1757_v50  ;;  %v1182_v50 = vld [vmem:[%s1971_s6] ss:$0 sm:$0xff] }
 0x18a   :  { %v787_v10 = vmul.f32 %v1180_v55, %v782_v44 }
 0x18c   :  { %v792_v11 = vadd.f32 %v1181_v9, %v787_v10 }
 0x18e   :  { %v845_v16 = vand.u32 4294901760, %v792_v11 }
 0x190   :  { %951 = vmatmul.f32.vlgmr.msrb.gmra.mxu1 %v845_v16  ;;  %v846_v17 = vsub.f32 %v792_v11, %v845_v16 }
 0x192   :  { %1005 = vmatmul.f32.vlgmr.msrb.gmra.mxu2 %v846_v17  ;;  %v847_v19 = vand.u32 4294901760, %v846_v17 }
 0x194   :  { %1044 = vmatmul.f32.vlgmr.msrb.gmra.mxu3 %v847_v19  ;;  %v848_v23 = vsub.f32 %v846_v17, %v847_v19 }
 0x196   :  { %v849_v27 = vand.u32 4294901760, %v848_v23 }
 0x198   :  { %850 = vmatmul.f32.vlgmr.msrb.gmra.mxu0 %v849_v27  ;;  %1150 = vmatmul.f32.vlgmr.msra.gmra.mxu1 %v845_v16 }
 0x1a0   :  { %1113 = vmatmul.f32.vlgmr.msra.gmra.mxu0 %v845_v16 }
 0x20d   :  { %v952_v28 = vpop.f32.mrf.mxu1 }
 0x215   :  { %v851_v43 = vpop.f32.mrf.mxu0  ;;  %v1006_v56 = vpop.f32.mrf.mxu2 }
 0x216   :  { %v852_v45 = vadd.f32 %v1182_v50, %v851_v43  ;;  %v1151_v39 = vpop.f32.mrf.mxu1 }
 0x217   :  { %v1045_v63 = vpop.f32.mrf.mxu3 }
 0x218   :  { %v953_v46 = vadd.f32 %v952_v28, %v852_v45 }
 0x21a   :  { %v1007_v57 = vadd.f32 %v1006_v56, %v953_v46 }
 0x21c   :  { %v1046_v6 = vadd.f32 %v1045_v63, %v1007_v57 }
 0x21d   :  { %v1114_v18 = vpop.f32.mrf.mxu0 }
 0x21e   :  { %v1115_v26 = vadd.f32 %v1114_v18, %v1046_v6 }
 0x220   :  { %v1152_v42 = vadd.f32 %v1151_v39, %v1115_v26 }
 0x222   :  { %v1154_v47 = vadd.f32 %v1152_v42, %v1997_v49 }
 0x224   :  { %1155 = vst [vmem:[#allocation10] sm:$0xf] %v1154_v47 }
 0x225   :  { %1166 = dma.vmem_to_hbm [thread:$0]  %s1162_s19, 64, %s1164_s22, [#allocation6]  }
 0x226   :  { %1285 = dma.done.wait [#allocation6], 64  }
 0x227   :  { %1286 = vsyncadd [#allocation6], 4294967232 }
 0x228   :  { %1171 = vsyncpa [#allocation5], 1 }
 0x229   :  { %1172 = vsyncpa [#allocation8], 1 }
 0x22a   :  { %1173 = vsyncpa [#allocation6], 1 }

</bundles_post_ra>
